<compile_context>
chip_gen: v7x
topology: tpu7x:2x2x1
jax: 0.10.0
libtpu: 0.0.40
codegen_flags: <defaults>
</compile_context>

<pallas_src>
import functools

import jax
import jax.numpy as jnp
from jax.experimental import pallas as pl
from jax.experimental.pallas import tpu as pltpu

L2_REG = 0.02   # matches NPairLoss(l2_reg=0.02)


def _npair_kernel(anchor_ref, pos_t_ref, tcol_ref, trow_ref, out_ref,
                  m_sc, l_sc, wsum_sc, cnt_sc, *, n):
    """One (anchor-row-tile i, positive-column-tile j) grid step.

    anchor_ref : (TM, D)  anchor rows of this row tile (1 DMA per row tile)
    pos_t_ref  : (D, TN)  positives, pre-transposed (resident when TN == N)
    tcol_ref   : (TM, 1)  int32 labels of this row tile
    trow_ref   : (1, TN)  int32 labels of this column tile
    out_ref    : (TM, 1)  per-row partial loss, written at the last column step
    m_sc/l_sc  : (TM, 1)  online-softmax running max / running sum
    wsum_sc    : (TM, 1)  running sum_j eq_ij * logit_ij
    cnt_sc     : (TM, 1)  running sum_j eq_ij  (class-match count)
    """
    i = pl.program_id(0)
    j = pl.program_id(1)
    tm = anchor_ref.shape[0]
    tn = pos_t_ref.shape[1]

    @pl.when(j == 0)
    def _():
        m_sc[...] = jnp.full(m_sc.shape, -jnp.inf, jnp.float32)
        l_sc[...] = jnp.zeros(l_sc.shape, jnp.float32)
        wsum_sc[...] = jnp.zeros(wsum_sc.shape, jnp.float32)
        cnt_sc[...] = jnp.zeros(cnt_sc.shape, jnp.float32)

    anchor = anchor_ref[...]                                   # (TM, D)

    # Plain NN matmul on the MXU: (TM, D) @ (D, TN).
    logit = jnp.dot(anchor, pos_t_ref[...],
                    preferred_element_type=jnp.float32)        # (TM, TN)

    # Mask padded columns of the edge tile BEFORE anything is accumulated so
    # block-padding garbage can never pollute a valid row's accumulator.
    col_ids = j * tn + jax.lax.broadcasted_iota(jnp.int32, (1, tn), 1)
    col_valid = col_ids < n                                    # (1, TN)
    logit_m = jnp.where(col_valid, logit, jnp.float32(-1e30))  # (TM, TN)
    eq = jnp.where(col_valid,
                   (tcol_ref[...] == trow_ref[...]).astype(jnp.float32),
                   0.0)                                        # (TM, TN)

    # Online logsumexp across column tiles.
    m_new = jnp.maximum(m_sc[...], jnp.max(logit_m, axis=-1, keepdims=True))
    alpha = jnp.exp(m_sc[...] - m_new)
    l_sc[...] = alpha * l_sc[...] + jnp.sum(jnp.exp(logit_m - m_new),
                                            axis=-1, keepdims=True)
    m_sc[...] = m_new

    # Fused CE pieces: ce_i = lse_i - (1/cnt_i) * sum_j eq_ij * logit_ij
    # (uses masked logits so eq==0 padded columns contribute exactly 0).
    wsum_sc[...] += jnp.sum(eq * logit_m, axis=-1, keepdims=True)
    cnt_sc[...] += jnp.sum(eq, axis=-1, keepdims=True)

    @pl.when(j == pl.num_programs(1) - 1)
    def _():
        lse = m_sc[...] + jnp.log(l_sc[...])                   # (TM, 1)
        ce = lse - wsum_sc[...] * pl.reciprocal(cnt_sc[...])   # exact reciprocal
        a_l2 = jnp.sum(anchor * anchor, axis=-1, keepdims=True)
        contrib = ce + (L2_REG * 0.25) * a_l2
        # Mask padded rows of the edge row tile (N % TM != 0).
        row_ids = i * tm + jax.lax.broadcasted_iota(jnp.int32, (tm, 1), 0)
        out_ref[...] = jnp.where(row_ids < n, contrib, 0.0)


def _tpu_vmem_capacity_bytes():
    """Per-TensorCore VMEM capacity; conservative fallback if unavailable."""
    try:
        info = pltpu.get_tpu_info()
        cap = getattr(info, "vmem_capacity_bytes", None)
        if cap:
            return int(cap)
    except Exception:
        pass
    return 64 * 1024 * 1024          # v7x per-core VMEM (smallest current gen)


def _mxu_native_rows():
    """256 on v6e/v7x (2x256x256 MXU), 128 on v5e and earlier."""
    try:
        kind = jax.devices()[0].device_kind.lower()
        if any(v in kind for v in ("v2", "v3", "v4", "v5")):
            return 128
    except Exception:
        pass
    return 256


def _select_tiles(n, d, resident_budget_bytes, block_rows, block_cols):
    if block_rows is not None:
        tm = block_rows
    elif n <= 256:
        tm = n                                    # single row tile, no padding
    else:
        tm = _mxu_native_rows()

    def est_vmem(tn):
        # double-buffered anchor + positive tiles, ~6 live (TM, TN) f32
        # temporaries, (TM, 1) accumulators.
        return 4 * (2 * tm * d + 2 * d * tn + 6 * tm * tn + 8 * tm)

    if block_cols is not None:
        tn = block_cols
    elif n <= 512 or est_vmem(n) <= resident_budget_bytes:
        tn = n           # positives stay VMEM-resident: one HBM read total
    else:
        tn = 512         # stream column tiles with the online-softmax path
    return tm, tn


def npair_loss(embs, target, block_rows=None, block_cols=None):
    """embs: (2N, D) float32 interleaved [a_0, p_0, a_1, p_1, ...];
    target: (N,) integer class labels."""
    two_n, d = embs.shape
    n = two_n // 2

    # Wrapper-side layout plumbing (one fused XLA pass over embs): split the
    # interleaved rows into anchors (N, D) and pre-transposed positives (D, N)
    # so the kernel reads every embedding byte from HBM exactly once and never
    # re-slices / re-transposes a loop-invariant operand per grid step.
    pairs = embs.reshape(n, 2, d)
    anchor = pairs[:, 0, :]
    positive = pairs[:, 1, :]
    pos_t = positive.T
    tcol = target.astype(jnp.int32).reshape(n, 1)
    trow = target.astype(jnp.int32).reshape(1, n)

    vmem_limit = (_tpu_vmem_capacity_bytes() * 5) // 8   # headroom for Mosaic scratch
    tm, tn = _select_tiles(n, d, vmem_limit // 2, block_rows, block_cols)
    n_row = pl.cdiv(n, tm)
    n_col = pl.cdiv(n, tn)

    kernel = functools.partial(_npair_kernel, n=n)

    partials = pl.pallas_call(
        kernel,
        out_shape=jax.ShapeDtypeStruct((n_row * tm, 1), jnp.float32),
        grid=(n_row, n_col),
        in_specs=[
            pl.BlockSpec((tm, d), lambda i, j: (i, 0)),   # anchors: 1 DMA / row tile
            pl.BlockSpec((d, tn), lambda i, j: (0, j)),   # positives^T (resident if n_col==1)
            pl.BlockSpec((tm, 1), lambda i, j: (i, 0)),   # labels of this row tile
            pl.BlockSpec((1, tn), lambda i, j: (0, j)),   # labels of this column tile
        ],
        out_specs=pl.BlockSpec((tm, 1), lambda i, j: (i, 0)),
        scratch_shapes=[pltpu.VMEM((tm, 1), jnp.float32)] * 4,
        compiler_params=pltpu.CompilerParams(
            dimension_semantics=("parallel", "arbitrary"),  # megacore over row tiles
            vmem_limit_bytes=vmem_limit,
        ),
    )(anchor, pos_t, tcol, trow)

    # Positive-L2 term: tiny reduction that XLA fuses with the de-interleave
    # pass above (the minor term of the loss; anchor-L2 is done in-kernel).
    pos_l2 = jnp.sum(positive * positive)

    # loss = mean_i(ce_i) + l2_reg/4 * (sum||a||^2/N + sum||p||^2/N)
    return (jnp.sum(partials) + (L2_REG * 0.25) * pos_l2) / n


def _npair_loss_ref(embs, target):
    """Pure-JAX reference mirroring the PyTorch forward."""
    two_n, d = embs.shape
    n = two_n // 2
    pairs = embs.reshape(n, 2, d)
    anchor, positive = pairs[:, 0, :], pairs[:, 1, :]
    t = target.reshape(n, 1)
    tgt = (t == t.T).astype(jnp.float32)
    tgt = tgt / jnp.sum(tgt, axis=1, keepdims=True)
    logit = anchor @ positive.T
    logp = jax.nn.log_softmax(logit, axis=-1)
    loss_ce = jnp.mean(jnp.sum(-tgt * logp, axis=-1))
    l2 = jnp.sum(anchor ** 2) / n + jnp.sum(positive ** 2) / n
    return loss_ce + L2_REG * l2 * 0.25


if __name__ == "__main__":
    key = jax.random.PRNGKey(0)
    k1, k2, k3, k4 = jax.random.split(key, 4)

    # Small case: single row tile, single (resident) column tile.
    N, D = 8, 32
    embs = jax.random.normal(k1, (2 * N, D), dtype=jnp.float32)
    target = jax.random.randint(k2, (N,), 0, 4, dtype=jnp.int32)
    loss = jax.block_until_ready(jax.jit(npair_loss)(embs, target))
    ref = jax.block_until_ready(_npair_loss_ref(embs, target))
    assert jnp.allclose(loss, ref, rtol=1e-5, atol=1e-5), (loss, ref)

    # Larger case with forced row + column tiling: exercises the padded-row /
    # padded-column masks and the online-softmax accumulation across col tiles.
    N2, D2 = 300, 64
    embs2 = jax.random.normal(k3, (2 * N2, D2), dtype=jnp.float32)
    target2 = jax.random.randint(k4, (N2,), 0, 4, dtype=jnp.int32)
    tiled = functools.partial(npair_loss, block_rows=128, block_cols=256)
    loss2 = jax.block_until_ready(jax.jit(tiled)(embs2, target2))
    ref2 = jax.block_until_ready(_npair_loss_ref(embs2, target2))
    assert jnp.allclose(loss2, ref2, rtol=1e-4, atol=1e-4), (loss2, ref2)

    print("KERNEL_OK")
</pallas_src>

<mosaic_0001>
module attributes {stable_mosaic.version = 11 : i64} {
  func.func @_npair_kernel(%arg0: i32, %arg1: i32, %arg2: memref<8x32xf32, #tpu.memory_space<vmem>>, %arg3: memref<32x8xf32, #tpu.memory_space<vmem>>, %arg4: memref<8x1xi32, #tpu.memory_space<vmem>>, %arg5: memref<1x8xi32, #tpu.memory_space<vmem>>, %arg6: memref<8x1xf32, #tpu.memory_space<vmem>>, %arg7: memref<8x1xf32, #tpu.memory_space<vmem>>, %arg8: memref<8x1xf32, #tpu.memory_space<vmem>>, %arg9: memref<8x1xf32, #tpu.memory_space<vmem>>, %arg10: memref<8x1xf32, #tpu.memory_space<vmem>>) attributes {dimension_semantics = [#tpu.dimension_semantics<parallel>, #tpu.dimension_semantics<arbitrary>], iteration_bounds = array<i64: 1, 1>, scalar_prefetch = 0 : i64, scratch_operands = 4 : i64, tpu.core_type = #tpu.core_type<tc>, window_params = [{transform_indices = @transform_0, window_bounds = array<i64: 8, 32>}, {transform_indices = @transform_1, window_bounds = array<i64: 32, 8>}, {transform_indices = @transform_2, window_bounds = array<i64: 8, 1>}, {transform_indices = @transform_3, window_bounds = array<i64: 1, 8>}, {transform_indices = @transform_4, window_bounds = array<i64: 8, 1>}]} {
    %c0_i32 = arith.constant 0 : i32
    %0 = arith.cmpi eq, %arg1, %c0_i32 : i32
    %1 = arith.extui %0 : i1 to i32
    %c0_i32_0 = arith.constant 0 : i32
    %2 = arith.cmpi ne, %1, %c0_i32_0 : i32
    scf.if %2 {
      %cst_35 = arith.constant 0xFF800000 : f32
      %58 = vector.broadcast %cst_35 : f32 to vector<8x1xf32>
      %c0_36 = arith.constant 0 : index
      %c0_37 = arith.constant 0 : index
      %59 = vector.load %arg7[%c0_36, %c0_37] : memref<8x1xf32, #tpu.memory_space<vmem>>, vector<8x1xf32>
      tpu.vector_store %arg7[%c0_36, %c0_37], %58 {strides = array<i32>} : memref<8x1xf32, #tpu.memory_space<vmem>>, vector<8x1xf32>,
      %cst_38 = arith.constant 0.000000e+00 : f32
      %60 = vector.broadcast %cst_38 : f32 to vector<8x1xf32>
      %c0_39 = arith.constant 0 : index
      %c0_40 = arith.constant 0 : index
      %61 = vector.load %arg8[%c0_39, %c0_40] : memref<8x1xf32, #tpu.memory_space<vmem>>, vector<8x1xf32>
      tpu.vector_store %arg8[%c0_39, %c0_40], %60 {strides = array<i32>} : memref<8x1xf32, #tpu.memory_space<vmem>>, vector<8x1xf32>,
      %cst_41 = arith.constant 0.000000e+00 : f32
      %62 = vector.broadcast %cst_41 : f32 to vector<8x1xf32>
      %c0_42 = arith.constant 0 : index
      %c0_43 = arith.constant 0 : index
      %63 = vector.load %arg9[%c0_42, %c0_43] : memref<8x1xf32, #tpu.memory_space<vmem>>, vector<8x1xf32>
      tpu.vector_store %arg9[%c0_42, %c0_43], %62 {strides = array<i32>} : memref<8x1xf32, #tpu.memory_space<vmem>>, vector<8x1xf32>,
      %cst_44 = arith.constant 0.000000e+00 : f32
      %64 = vector.broadcast %cst_44 : f32 to vector<8x1xf32>
      %c0_45 = arith.constant 0 : index
      %c0_46 = arith.constant 0 : index
      %65 = vector.load %arg10[%c0_45, %c0_46] : memref<8x1xf32, #tpu.memory_space<vmem>>, vector<8x1xf32>
      tpu.vector_store %arg10[%c0_45, %c0_46], %64 {strides = array<i32>} : memref<8x1xf32, #tpu.memory_space<vmem>>, vector<8x1xf32>,
    } else {
    }
    %c0 = arith.constant 0 : index
    %c0_1 = arith.constant 0 : index
    %3 = vector.load %arg2[%c0, %c0_1] : memref<8x32xf32, #tpu.memory_space<vmem>>, vector<8x32xf32>
    %c0_2 = arith.constant 0 : index
    %c0_3 = arith.constant 0 : index
    %4 = vector.load %arg3[%c0_2, %c0_3] : memref<32x8xf32, #tpu.memory_space<vmem>>, vector<32x8xf32>
    %cst = arith.constant dense<0.000000e+00> : vector<8x8xf32>
    %5 = tpu.matmul %3, %4, %cst {dimension_numbers = #tpu.dot_dimension_numbers<[1], [0], [0], [1], [0, 0, 1, 1], [], []>} : vector<8x32xf32>, vector<32x8xf32>, vector<8x8xf32> -> vector<8x8xf32>
    %c8_i32 = arith.constant 8 : i32
    %6 = arith.muli %arg1, %c8_i32 : i32
    %7 = tpu.iota {dimensions = array<i32: 1>} : vector<1x8xi32>
    %8 = vector.broadcast %6 : i32 to vector<1x8xi32>
    %9 = arith.addi %8, %7 : vector<1x8xi32>
    %c8_i32_4 = arith.constant 8 : i32
    %10 = vector.broadcast %c8_i32_4 : i32 to vector<1x8xi32>
    %11 = arith.cmpi slt, %9, %10 : vector<1x8xi32>
    %cst_5 = arith.constant -1.000000e+30 : f32
    %12 = vector.shape_cast %11 : vector<1x8xi1> to vector<1x8xi1>
    %13 = vector.broadcast %12 : vector<1x8xi1> to vector<8x8xi1>
    %14 = vector.broadcast %cst_5 : f32 to vector<8x8xf32>
    %15 = arith.select %13, %5, %14 : vector<8x8xi1>, vector<8x8xf32>
    %c0_6 = arith.constant 0 : index
    %c0_7 = arith.constant 0 : index
    %16 = vector.load %arg4[%c0_6, %c0_7] : memref<8x1xi32, #tpu.memory_space<vmem>>, vector<8x1xi32>
    %c0_8 = arith.constant 0 : index
    %c0_9 = arith.constant 0 : index
    %17 = vector.load %arg5[%c0_8, %c0_9] : memref<1x8xi32, #tpu.memory_space<vmem>>, vector<1x8xi32>
    %18 = vector.broadcast %16 : vector<8x1xi32> to vector<8x8xi32>
    %19 = vector.broadcast %17 : vector<1x8xi32> to vector<8x8xi32>
    %20 = arith.cmpi eq, %18, %19 : vector<8x8xi32>
    %21 = arith.extui %20 : vector<8x8xi1> to vector<8x8xi32>
    %22 = arith.sitofp %21 : vector<8x8xi32> to vector<8x8xf32>
    %cst_10 = arith.constant 0.000000e+00 : f32
    %23 = vector.shape_cast %11 : vector<1x8xi1> to vector<1x8xi1>
    %24 = vector.broadcast %23 : vector<1x8xi1> to vector<8x8xi1>
    %25 = vector.broadcast %cst_10 : f32 to vector<8x8xf32>
    %26 = arith.select %24, %22, %25 : vector<8x8xi1>, vector<8x8xf32>
    %c0_11 = arith.constant 0 : index
    %c0_12 = arith.constant 0 : index
    %27 = vector.load %arg7[%c0_11, %c0_12] : memref<8x1xf32, #tpu.memory_space<vmem>>, vector<8x1xf32>
    %cst_13 = arith.constant dense<0xFF800000> : vector<8xf32>
    %28 = vector.multi_reduction <maximumf>, %15, %cst_13 [1] : vector<8x8xf32> to vector<8xf32>
    %29 = vector.shape_cast %28 : vector<8xf32> to vector<8x1xf32>
    %30 = arith.maximumf %27, %29 : vector<8x1xf32>
    %c0_14 = arith.constant 0 : index
    %c0_15 = arith.constant 0 : index
    %31 = vector.load %arg7[%c0_14, %c0_15] : memref<8x1xf32, #tpu.memory_space<vmem>>, vector<8x1xf32>
    %32 = arith.subf %31, %30 : vector<8x1xf32>
    %33 = math.exp %32 : vector<8x1xf32>
    %c0_16 = arith.constant 0 : index
    %c0_17 = arith.constant 0 : index
    %34 = vector.load %arg8[%c0_16, %c0_17] : memref<8x1xf32, #tpu.memory_space<vmem>>, vector<8x1xf32>
    %35 = arith.mulf %33, %34 : vector<8x1xf32>
    %36 = vector.broadcast %30 : vector<8x1xf32> to vector<8x8xf32>
    %37 = arith.subf %15, %36 : vector<8x8xf32>
    %38 = math.exp %37 : vector<8x8xf32>
    %cst_18 = arith.constant dense<0.000000e+00> : vector<8xf32>
    %39 = vector.multi_reduction <add>, %38, %cst_18 [1] : vector<8x8xf32> to vector<8xf32>
    %40 = vector.shape_cast %39 : vector<8xf32> to vector<8x1xf32>
    %41 = arith.addf %35, %40 : vector<8x1xf32>
    %c0_19 = arith.constant 0 : index
    %c0_20 = arith.constant 0 : index
    %42 = vector.load %arg8[%c0_19, %c0_20] : memref<8x1xf32, #tpu.memory_space<vmem>>, vector<8x1xf32>
    tpu.vector_store %arg8[%c0_19, %c0_20], %41 {strides = array<i32>} : memref<8x1xf32, #tpu.memory_space<vmem>>, vector<8x1xf32>,
    %c0_21 = arith.constant 0 : index
    %c0_22 = arith.constant 0 : index
    %43 = vector.load %arg7[%c0_21, %c0_22] : memref<8x1xf32, #tpu.memory_space<vmem>>, vector<8x1xf32>
    tpu.vector_store %arg7[%c0_21, %c0_22], %30 {strides = array<i32>} : memref<8x1xf32, #tpu.memory_space<vmem>>, vector<8x1xf32>,
    %c0_23 = arith.constant 0 : index
    %c0_24 = arith.constant 0 : index
    %44 = vector.load %arg9[%c0_23, %c0_24] : memref<8x1xf32, #tpu.memory_space<vmem>>, vector<8x1xf32>
    %45 = arith.mulf %26, %15 : vector<8x8xf32>
    %cst_25 = arith.constant dense<0.000000e+00> : vector<8xf32>
    %46 = vector.multi_reduction <add>, %45, %cst_25 [1] : vector<8x8xf32> to vector<8xf32>
    %47 = vector.shape_cast %46 : vector<8xf32> to vector<8x1xf32>
    %48 = arith.addf %44, %47 : vector<8x1xf32>
    %c0_26 = arith.constant 0 : index
    %c0_27 = arith.constant 0 : index
    %49 = vector.load %arg9[%c0_26, %c0_27] : memref<8x1xf32, #tpu.memory_space<vmem>>, vector<8x1xf32>
    tpu.vector_store %arg9[%c0_26, %c0_27], %48 {strides = array<i32>} : memref<8x1xf32, #tpu.memory_space<vmem>>, vector<8x1xf32>,
    %c0_28 = arith.constant 0 : index
    %c0_29 = arith.constant 0 : index
    %50 = vector.load %arg10[%c0_28, %c0_29] : memref<8x1xf32, #tpu.memory_space<vmem>>, vector<8x1xf32>
    %cst_30 = arith.constant dense<0.000000e+00> : vector<8xf32>
    %51 = vector.multi_reduction <add>, %26, %cst_30 [1] : vector<8x8xf32> to vector<8xf32>
    %52 = vector.shape_cast %51 : vector<8xf32> to vector<8x1xf32>
    %53 = arith.addf %50, %52 : vector<8x1xf32>
    %c0_31 = arith.constant 0 : index
    %c0_32 = arith.constant 0 : index
    %54 = vector.load %arg10[%c0_31, %c0_32] : memref<8x1xf32, #tpu.memory_space<vmem>>, vector<8x1xf32>
    tpu.vector_store %arg10[%c0_31, %c0_32], %53 {strides = array<i32>} : memref<8x1xf32, #tpu.memory_space<vmem>>, vector<8x1xf32>,
    %c0_i32_33 = arith.constant 0 : i32
    %55 = arith.cmpi eq, %arg1, %c0_i32_33 : i32
    %56 = arith.extui %55 : i1 to i32
    %c0_i32_34 = arith.constant 0 : i32
    %57 = arith.cmpi ne, %56, %c0_i32_34 : i32
    scf.if %57 {
      %c0_35 = arith.constant 0 : index
      %c0_36 = arith.constant 0 : index
      %58 = vector.load %arg7[%c0_35, %c0_36] : memref<8x1xf32, #tpu.memory_space<vmem>>, vector<8x1xf32>
      %c0_37 = arith.constant 0 : index
      %c0_38 = arith.constant 0 : index
      %59 = vector.load %arg8[%c0_37, %c0_38] : memref<8x1xf32, #tpu.memory_space<vmem>>, vector<8x1xf32>
      %60 = math.log %59 : vector<8x1xf32>
      %61 = arith.addf %58, %60 : vector<8x1xf32>
      %c0_39 = arith.constant 0 : index
      %c0_40 = arith.constant 0 : index
      %62 = vector.load %arg9[%c0_39, %c0_40] : memref<8x1xf32, #tpu.memory_space<vmem>>, vector<8x1xf32>
      %c0_41 = arith.constant 0 : index
      %c0_42 = arith.constant 0 : index
      %63 = vector.load %arg10[%c0_41, %c0_42] : memref<8x1xf32, #tpu.memory_space<vmem>>, vector<8x1xf32>
      %64 = tpu.reciprocal %63 : vector<8x1xf32> -> vector<8x1xf32>
      %65 = arith.mulf %62, %64 : vector<8x1xf32>
      %66 = arith.subf %61, %65 : vector<8x1xf32>
      %67 = arith.mulf %3, %3 : vector<8x32xf32>
      %cst_43 = arith.constant dense<0.000000e+00> : vector<8xf32>
      %68 = vector.multi_reduction <add>, %67, %cst_43 [1] : vector<8x32xf32> to vector<8xf32>
      %69 = vector.shape_cast %68 : vector<8xf32> to vector<8x1xf32>
      %cst_44 = arith.constant 5.000000e-03 : f32
      %70 = vector.broadcast %cst_44 : f32 to vector<8x1xf32>
      %71 = arith.mulf %70, %69 : vector<8x1xf32>
      %72 = arith.addf %66, %71 : vector<8x1xf32>
      %c8_i32_45 = arith.constant 8 : i32
      %73 = arith.muli %arg0, %c8_i32_45 : i32
      %74 = tpu.iota {dimensions = array<i32: 0>} : vector<8x1xi32>
      %75 = vector.broadcast %73 : i32 to vector<8x1xi32>
      %76 = arith.addi %75, %74 : vector<8x1xi32>
      %c8_i32_46 = arith.constant 8 : i32
      %77 = vector.broadcast %c8_i32_46 : i32 to vector<8x1xi32>
      %78 = arith.cmpi slt, %76, %77 : vector<8x1xi32>
      %cst_47 = arith.constant 0.000000e+00 : f32
      %79 = vector.broadcast %cst_47 : f32 to vector<8x1xf32>
      %80 = arith.select %78, %72, %79 : vector<8x1xi1>, vector<8x1xf32>
      %c0_48 = arith.constant 0 : index
      %c0_49 = arith.constant 0 : index
      %81 = vector.load %arg6[%c0_48, %c0_49] : memref<8x1xf32, #tpu.memory_space<vmem>>, vector<8x1xf32>
      tpu.vector_store %arg6[%c0_48, %c0_49], %80 {strides = array<i32>} : memref<8x1xf32, #tpu.memory_space<vmem>>, vector<8x1xf32>,
    } else {
    }
    return
  }
  func.func @transform_0(%arg0: i32, %arg1: i32) -> (i32, i32) {
    %c0_i32 = arith.constant 0 : i32
    %c0_i32_0 = arith.constant 0 : i32
    return %arg0, %c0_i32 : i32, i32
  }
  func.func @transform_1(%arg0: i32, %arg1: i32) -> (i32, i32) {
    %c0_i32 = arith.constant 0 : i32
    %c0_i32_0 = arith.constant 0 : i32
    return %c0_i32, %arg1 : i32, i32
  }
  func.func @transform_2(%arg0: i32, %arg1: i32) -> (i32, i32) {
    %c0_i32 = arith.constant 0 : i32
    %c0_i32_0 = arith.constant 0 : i32
    return %arg0, %c0_i32 : i32, i32
  }
  func.func @transform_3(%arg0: i32, %arg1: i32) -> (i32, i32) {
    %c0_i32 = arith.constant 0 : i32
    %c0_i32_0 = arith.constant 0 : i32
    return %c0_i32, %arg1 : i32, i32
  }
  func.func @transform_4(%arg0: i32, %arg1: i32) -> (i32, i32) {
    %c0_i32 = arith.constant 0 : i32
    %c0_i32_0 = arith.constant 0 : i32
    return %arg0, %c0_i32 : i32, i32
  }
}

</mosaic_0001>

<bundles_post_ra>
// kernel: npair_loss.1
= control target key start
LH: loop header
LB: loop body
LE: loop exit
PB: predicated region body
PF: predicated region fallthrough
CT: control target
= control target key end

     0   :  { %v237_v0 = vmov 0.0|0.0   ;;  %vm238_vm0 = vmmov 0   ;;  %v239_v4 = vmov 0.0   ;;  %v240_v7 = vmov 0   ;;  %s308_s1 = inlined_call_operand.vmem [shape: f32[32,8], index: 1, kind: input, shape index: {}]   ;;  %s309_s2 = inlined_call_operand.vmem [shape: s32[8,1], index: 2, kind: input, shape index: {}]   ;;  %s310_s0 = inlined_call_operand.vmem [shape: f32[8,32], index: 0, kind: input, shape index: {}]   ;;  %s311_s3 = inlined_call_operand.vmem [shape: s32[1,8], index: 3, kind: input, shape index: {}]   ;;  %s312_s4 = inlined_call_operand.vmem [shape: f32[8,1], index: 4, kind: output, shape index: {}]  }
   0x1   :  { %216 = vmatprep.subr.bf16.mxu0 %v237_v0  ;;  %v27_v1 = vld [vmem:[%s308_s1] sm:$0xff]  ;;  %v28_v2 = vld [vmem:[%s308_s1 + $0x8] sm:$0xff]  ;;  %v29_v3 = vld [vmem:[%s308_s1 + $0x10] sm:$0xff]  ;;  %213 = vmatprep.mubr.msk.f32.mxu0 %vm238_vm0, %v239_v4  ;;  %vm31_vm1 = vcmask 261120   ;;  %vm21_vm2 = vcmask 7168   ;;  %v241_v11 = vmov -inf   ;;  %v106_v12 = vlaneseq }
   0x2   :  { %v217_v5 = vpack.c.bf16 %v28_v2, %v27_v1  ;;  %v30_v6 = vld [vmem:[%s308_s1 + $0x18] sm:$0xff]  ;;  %228 = vset.pattern.permute.xlu1 %v240_v7  ;;  %v114_v8 = vld [vmem:[%s309_s2] sm:$0xff]  ;;  %227 = vset.pattern.permute.xlu0 %v240_v7  ;;  %22 = vst.msk [vmem:[#allocation2] sm:$0xff] %vm21_vm2, %v241_v11  ;;  %23 = vst.msk [vmem:[#allocation3] sm:$0xff] %vm21_vm2, %v239_v4  ;;  %vm128_vm4 = vcmask 64512  }
   0x3   :  { %117 = vperm.xlu1 %228, %v114_v8   ;;  %v220_v9 = vpack.c.bf16 %v30_v6, %v29_v3  ;;  %v26_v10 = vld [vmem:[%s310_s0] sm:$0xff]  ;;  %24 = vst.msk [vmem:[#allocation4] sm:$0xff] %vm21_vm2, %v239_v4  ;;  %25 = vst.msk [vmem:[#allocation5] sm:$0xff] %vm21_vm2, %v239_v4  ;;  %v107_v13 = vand.u32 127, %v106_v12 }
   0x4   :  { %218 = vmatpush3.bf16.msra.mxu0 %v217_v5  ;;  %v179_v22 = vmul.f32 %v26_v10, %v26_v10  ;;  %v198_v27 = vld [vmem:[%s311_s3] ss:$0 sm:$0xff] }
   0x5   :  { %219 = vmatprep.subr.bf16.mxu0 %v237_v0  ;;  %vm110_vm3 = vcmp.lt.s32.totalorder %v107_v13, 8 }
   0x6   :  { %v180_v23 = vsel %vm31_vm1, %v179_v22, 0.0 }
   0x8   :  { %221 = vmatpush3.bf16.msra.mxu0 %v220_v9 }
   0x9   :  { %v127_v18 = vld [vmem:[#allocation2] sm:$0xff]  ;;  %v136_v38 = vld [vmem:[#allocation3] sm:$0xff] }
   0xa   :  { %v160_v42 = vld [vmem:[#allocation5] sm:$0xff]  ;;  %v153_v45 = vld [vmem:[#allocation4] sm:$0xff] }
   0xb   :  { %214 = vmatmul.mubr.msk.f32.vlgmr.msra.gmra.mrb[0].mxu0 %vm31_vm1, %v26_v10 }
  0x82   :  { %v118_v28 = vpop.permute.xlu1 %117 }
  0x83   :  { %vm123_vm5 = vcmp.eq.s32.totalorder %v118_v28, %v198_v27 }
  0x84   :  { %v199_v29 = vsel %vm123_vm5, 1.0, %v239_v4 }
  0x85   :  { %v126_v32 = vsel %vm110_vm3, %v199_v29, 0.0 }
  0x86   :  { %v161_v33 = vsel %vm128_vm4, %v126_v32, 0.0 }
  0xde   :  { %v101_v14 = vpop.f32.mrb[0].mxu0 }
  0xdf   :  { %v113_v15 = vsel %vm110_vm3, %v101_v14, -1e+30  ;;  %v215_v16 = vpop.f32.mrb[1].mxu0 }
  0xe0   :  { %v129_v17 = vsel %vm128_vm4, %v113_v15, -inf  ;;  %v154_v34 = vmul.f32 %v126_v32, %v113_v15 }
  0xe1   :  { %130 = vmax.xlane.f32.xlu0 %v129_v17 }
  0xe2   :  { %v155_v35 = vsel %vm128_vm4, %v154_v34, 0.0 }
 0x16e   :  { %v131_v19 = vpop.xlane.xlu0 %130 }
 0x16f   :  { %v132_v20 = vmax.f32 %v127_v18, %v131_v19 }
 0x171   :  { %v133_v21 = vsub.f32 %v127_v18, %v132_v20  ;;  %152 = vst.msk [vmem:[#allocation2] sm:$0xff] %vm21_vm2, %v132_v20  ;;  %140 = vperm.xlu0 %227, %v132_v20  }
 0x173   :  { %v134_v36 = vmul.f32 1.442695, %v133_v21 }
 0x178   :  { %v169_v55 = vld [vmem:[#allocation2] sm:$0xff] }
 0x190   :  { %181 = vadd.xlane.f32.xlu0 %v180_v23 }
 0x1f0   :  { %v141_v24 = vpop.permute.xlu0 %140 }
 0x1f1   :  { %v143_v25 = vsub.f32 %v113_v15, %v141_v24 }
 0x1f3   :  { %v144_v26 = vmul.f32 1.442695, %v143_v25 }
 0x1f5   :  { %229 = vpow2.f32 %v144_v26 }
 0x1f6   :  { %231 = vpow2.f32 %v134_v36 }
 0x1ff   :  { %v230_v30 = vpop.eup %229 }
 0x200   :  { %v146_v31 = vsel %vm128_vm4, %v230_v30, 0.0  ;;  %v232_v37 = vpop.eup %231 }
 0x201   :  { %147 = vadd.xlane.f32.xlu1 %v146_v31  ;;  %v137_v39 = vmul.f32 %v232_v37, %v136_v38 }
 0x205   :  { %162 = vadd.xlane.f32.xlu1 %v161_v33 }
 0x209   :  { %156 = vadd.xlane.f32.xlu1 %v155_v35 }
 0x21d   :  { %v182_v52 = vpop.xlane.xlu0 %181 }
 0x21e   :  { %v183_v58 = vmul.f32 0.005, %v182_v52 }
 0x28e   :  { %v148_v40 = vpop.xlane.xlu1 %147 }
 0x28f   :  { %v149_v41 = vadd.f32 %v148_v40, %v137_v39 }
 0x291   :  { %151 = vst.msk [vmem:[#allocation3] sm:$0xff] %vm21_vm2, %v149_v41 }
 0x292   :  { %v163_v43 = vpop.xlane.xlu1 %162 }
 0x293   :  { %v164_v44 = vadd.f32 %v163_v43, %v160_v42 }
 0x295   :  { %165 = vst.msk [vmem:[#allocation5] sm:$0xff] %vm21_vm2, %v164_v44 }
 0x296   :  { %v157_v46 = vpop.xlane.xlu1 %156 }
 0x297   :  { %v158_v47 = vadd.f32 %v157_v46, %v153_v45 }
 0x298   :  { %v170_v48 = vld [vmem:[#allocation3] sm:$0xff] }
 0x299   :  { %159 = vst.msk [vmem:[#allocation4] sm:$0xff] %vm21_vm2, %v158_v47  ;;  %233 = vlog2.f32 %v170_v48 }
 0x29c   :  { %v175_v49 = vld [vmem:[#allocation5] sm:$0xff] }
 0x29d   :  { %235 = vrcp.f32 %v175_v49 }
 0x2a0   :  { %v174_v54 = vld [vmem:[#allocation4] sm:$0xff] }
 0x2a3   :  { %v234_v50 = vpop.eup %233 }
 0x2a4   :  { %v172_v51 = vmul.f32 0.6931472, %v234_v50 }
 0x2a6   :  { %v173_v57 = vadd.f32 %v172_v51, %v169_v55 }
 0x2a7   :  { %v236_v53 = vpop.eup %235 }
 0x2a8   :  { %v177_v56 = vmul.f32 %v236_v53, %v174_v54 }
 0x2aa   :  { %v178_v59 = vsub.f32 %v173_v57, %v177_v56 }
 0x2ac   :  { %v184_v60 = vadd.f32 %v183_v58, %v178_v59 }
 0x2ae   :  { %192 = vst.msk [vmem:[%s312_s4] sm:$0xff] %vm21_vm2, %v184_v60 }

</bundles_post_ra>
